<compile_context>
chip_gen: v7x
topology: tpu7x:2x2x1
jax: 0.10.0
libtpu: 0.0.40
codegen_flags: <defaults>
</compile_context>

<pallas_src>
import jax
import jax.numpy as jnp
from jax.experimental import pallas as pl
from jax.experimental.pallas import tpu as pltpu


def _round_up(n, m):
    return ((n + m - 1) // m) * m


def _decoder_kernel(x_ref, w_ref, b_ref, o_ref):
    """logits = x @ W^T + b ; out = log_softmax(logits, axis=-1).

    Padded output lanes arrive with bias == -1e30 (weight columns are zero),
    so they contribute nothing to max / exp / sum — no in-kernel masking.
    """
    logits = jnp.dot(x_ref[...], w_ref[...], preferred_element_type=jnp.float32)
    logits = logits + b_ref[...]  # f32 (1, O_pad), broadcasts over rows

    # Numerically stable log_softmax along the lane axis (== dim=1).
    m = jnp.max(logits, axis=-1, keepdims=True)
    shifted = logits - m
    lse = jnp.log(jnp.sum(jnp.exp(shifted), axis=-1, keepdims=True))
    o_ref[...] = (shifted - lse).astype(o_ref.dtype)


def pack_decoder_params(w, b, *, matmul_dtype=jnp.float32):
    """One-time parameter prep: W^T padded to (H_pad, O_pad), poisoned bias.

    w: (O, H) PyTorch nn.Linear layout.  b: (O,).
    Padded weight rows/cols are zero; padded bias lanes are -1e30 so padded
    logits are -1e30 (masked) with no extra kernel work.
    """
    O, H = w.shape
    H_pad = _round_up(max(H, 1), 128)
    O_pad = _round_up(max(O, 1), 128)
    w_t = jnp.zeros((H_pad, O_pad), matmul_dtype).at[:H, :O].set(
        jnp.transpose(w).astype(matmul_dtype)
    )
    b_p = jnp.full((1, O_pad), -1e30, jnp.float32).at[0, :O].set(
        b.astype(jnp.float32)
    )
    return w_t, b_p


def decoder_forward(
    x,
    w,
    b,
    *,
    packed_params=None,
    block_b=128,
    matmul_dtype=jnp.float32,
    out_dtype=jnp.float32,
):
    """Decoder forward.

    x: (B, H) float   w: (O, H) (nn.Linear layout)   b: (O,)
    Returns (B, O) `out_dtype` log-probabilities (log_softmax over dim=1).
    `packed_params` (from pack_decoder_params) can be passed to reuse the
    transposed / padded weights across calls.
    """
    B, H = x.shape
    O = w.shape[0]

    if packed_params is None:
        packed_params = pack_decoder_params(w, b, matmul_dtype=matmul_dtype)
    w_t, b_p = packed_params
    matmul_dtype = w_t.dtype
    H_pad, O_pad = w_t.shape

    # Batch tiling: clamp the tile to the real batch (rounded to sublanes).
    block_b = _round_up(max(8, block_b), 8)
    block_b = min(block_b, _round_up(max(B, 1), 8))
    B_pad = _round_up(max(B, 1), block_b)
    num_b_tiles = B_pad // block_b

    # Pack x (zeros in padding: padded H cols hit zero weight rows, padded
    # batch rows are sliced off at the end).
    x_p = jnp.zeros((B_pad, H_pad), matmul_dtype).at[:B, :H].set(
        x.astype(matmul_dtype)
    )

    itemsize = jnp.dtype(matmul_dtype).itemsize
    out_itemsize = jnp.dtype(out_dtype).itemsize

    # VMEM budget: resident weight (1 buffer) + double-buffered x / out tiles
    # + bias + f32 logits temporaries, with headroom.
    w_bytes = H_pad * O_pad * itemsize
    x_tile_bytes = block_b * H_pad * itemsize
    out_tile_bytes = block_b * O_pad * out_itemsize
    scratch_bytes = 2 * block_b * O_pad * 4  # f32 logits + shifted temporaries
    vmem_limit = int(
        1.25 * (w_bytes + 2 * x_tile_bytes + 2 * out_tile_bytes + O_pad * 4
                + scratch_bytes)
    ) + (2 << 20)
    vmem_limit = min(max(vmem_limit, 16 << 20), 100 << 20)

    # Megacore: only split the batch axis when the x stream per tile is at
    # least as big as the weight stream; otherwise a per-core copy of the
    # resident weight doubles weight HBM traffic (v7x) for no gain.
    batch_parallel = num_b_tiles > 1 and x_tile_bytes >= w_bytes
    dim_sems = ("parallel",) if batch_parallel else ("arbitrary",)

    # Weight is fetched once (constant index_map); update if O tiling is added.
    cost = pl.CostEstimate(
        flops=2 * B_pad * H_pad * O_pad,
        transcendentals=B_pad * O_pad,  # exp in the softmax
        bytes_accessed=(
            B_pad * H_pad * itemsize      # x
            + H_pad * O_pad * itemsize    # W^T (once)
            + O_pad * 4                   # bias
            + B_pad * O_pad * out_itemsize  # output
        ),
    )

    def _call(single_buffer_resident):
        if single_buffer_resident:
            w_spec = pl.BlockSpec((H_pad, O_pad), lambda i: (0, 0),
                                  pipeline_mode=pl.Buffered(1))
            b_spec = pl.BlockSpec((1, O_pad), lambda i: (0, 0),
                                  pipeline_mode=pl.Buffered(1))
        else:
            w_spec = pl.BlockSpec((H_pad, O_pad), lambda i: (0, 0))
            b_spec = pl.BlockSpec((1, O_pad), lambda i: (0, 0))
        return pl.pallas_call(
            _decoder_kernel,
            out_shape=jax.ShapeDtypeStruct((B_pad, O_pad), out_dtype),
            grid=(num_b_tiles,),
            in_specs=[
                pl.BlockSpec((block_b, H_pad), lambda i: (i, 0)),  # x tile
                w_spec,                                            # W^T resident
                b_spec,                                            # bias resident
            ],
            out_specs=pl.BlockSpec((block_b, O_pad), lambda i: (i, 0)),
            compiler_params=pltpu.CompilerParams(
                dimension_semantics=dim_sems,
                vmem_limit_bytes=vmem_limit,
            ),
            cost_estimate=cost,
        )(x_p, w_t, b_p)

    try:
        out_padded = _call(True)
    except Exception:
        # Fallback if this JAX version rejects Buffered(1) for resident inputs.
        out_padded = _call(False)

    return out_padded[:B, :O]


if __name__ == "__main__":
    # Small shapes consistent with the module: batch=16, hidden=32, out=16.
    B, HIDDEN, OUT = 16, 32, 16

    key = jax.random.PRNGKey(0)
    kx, kw, kb = jax.random.split(key, 3)

    # Deterministic "nn.Linear"-style init: U(-1/sqrt(hidden), 1/sqrt(hidden)).
    bound = 1.0 / (HIDDEN ** 0.5)
    w = jax.random.uniform(kw, (OUT, HIDDEN), jnp.float32, -bound, bound)
    b = jax.random.uniform(kb, (OUT,), jnp.float32, -bound, bound)
    x = jax.random.normal(kx, (B, HIDDEN), jnp.float32)

    # Pure-JAX reference.
    ref = jax.nn.log_softmax(x @ jnp.transpose(w) + b[None, :], axis=1)

    # f32 path: prepack params once, batch tiled into 2 grid steps.
    packed_f32 = pack_decoder_params(w, b, matmul_dtype=jnp.float32)
    out_f32 = decoder_forward(x, w, b, packed_params=packed_f32, block_b=8)
    out_f32 = jax.block_until_ready(out_f32)
    assert out_f32.shape == (B, OUT)
    assert jnp.allclose(out_f32, ref, atol=1e-5, rtol=1e-5), "f32 mismatch"

    # bf16 weight-stream path (valid on v5e/v6e/v7x); softmax math stays f32.
    out_bf16 = decoder_forward(x, w, b, block_b=128, matmul_dtype=jnp.bfloat16)
    out_bf16 = jax.block_until_ready(out_bf16)
    assert out_bf16.shape == (B, OUT)
    assert jnp.allclose(out_bf16, ref, atol=5e-2, rtol=5e-2), "bf16 mismatch"

    print("KERNEL_OK")
</pallas_src>

<mosaic_0001>
module attributes {stable_mosaic.version = 11 : i64} {
  func.func @_decoder_kernel(%arg0: i32, %arg1: memref<8x128xf32, #tpu.memory_space<vmem>>, %arg2: memref<128x128xf32, #tpu.memory_space<vmem>>, %arg3: memref<1x128xf32, #tpu.memory_space<vmem>>, %arg4: memref<8x128xf32, #tpu.memory_space<vmem>>) attributes {dimension_semantics = [#tpu.dimension_semantics<arbitrary>], iteration_bounds = array<i64: 2>, scalar_prefetch = 0 : i64, scratch_operands = 0 : i64, tpu.core_type = #tpu.core_type<tc>, window_params = [{transform_indices = @transform_0, window_bounds = array<i64: 8, 128>}, {pipeline_mode = #tpu.pipeline_mode<synchronous>, transform_indices = @transform_1, window_bounds = array<i64: 128, 128>}, {pipeline_mode = #tpu.pipeline_mode<synchronous>, transform_indices = @transform_2, window_bounds = array<i64: 1, 128>}, {transform_indices = @transform_3, window_bounds = array<i64: 8, 128>}]} {
    %c0 = arith.constant 0 : index
    %c0_0 = arith.constant 0 : index
    %0 = vector.load %arg1[%c0, %c0_0] : memref<8x128xf32, #tpu.memory_space<vmem>>, vector<8x128xf32>
    %c0_1 = arith.constant 0 : index
    %c0_2 = arith.constant 0 : index
    %1 = vector.load %arg2[%c0_1, %c0_2] : memref<128x128xf32, #tpu.memory_space<vmem>>, vector<128x128xf32>
    %cst = arith.constant dense<0.000000e+00> : vector<8x128xf32>
    %2 = tpu.matmul %0, %1, %cst {dimension_numbers = #tpu.dot_dimension_numbers<[1], [0], [0], [1], [0, 0, 1, 1], [], []>} : vector<8x128xf32>, vector<128x128xf32>, vector<8x128xf32> -> vector<8x128xf32>
    %c0_3 = arith.constant 0 : index
    %c0_4 = arith.constant 0 : index
    %3 = vector.load %arg3[%c0_3, %c0_4] : memref<1x128xf32, #tpu.memory_space<vmem>>, vector<1x128xf32>
    %4 = vector.broadcast %3 : vector<1x128xf32> to vector<8x128xf32>
    %5 = arith.addf %2, %4 : vector<8x128xf32>
    %cst_5 = arith.constant dense<0xFF800000> : vector<8xf32>
    %6 = vector.multi_reduction <maximumf>, %5, %cst_5 [1] : vector<8x128xf32> to vector<8xf32>
    %7 = vector.shape_cast %6 : vector<8xf32> to vector<8x1xf32>
    %8 = vector.broadcast %7 : vector<8x1xf32> to vector<8x128xf32>
    %9 = arith.subf %5, %8 : vector<8x128xf32>
    %10 = math.exp %9 : vector<8x128xf32>
    %cst_6 = arith.constant dense<0.000000e+00> : vector<8xf32>
    %11 = vector.multi_reduction <add>, %10, %cst_6 [1] : vector<8x128xf32> to vector<8xf32>
    %12 = vector.shape_cast %11 : vector<8xf32> to vector<8x1xf32>
    %13 = math.log %12 : vector<8x1xf32>
    %14 = vector.broadcast %13 : vector<8x1xf32> to vector<8x128xf32>
    %15 = arith.subf %9, %14 : vector<8x128xf32>
    %c0_7 = arith.constant 0 : index
    %c0_8 = arith.constant 0 : index
    %16 = vector.load %arg4[%c0_7, %c0_8] : memref<8x128xf32, #tpu.memory_space<vmem>>, vector<8x128xf32>
    tpu.vector_store %arg4[%c0_7, %c0_8], %15 {strides = array<i32>} : memref<8x128xf32, #tpu.memory_space<vmem>>, vector<8x128xf32>,
    return
  }
  func.func @transform_0(%arg0: i32) -> (i32, i32) {
    %c0_i32 = arith.constant 0 : i32
    %c0_i32_0 = arith.constant 0 : i32
    return %arg0, %c0_i32 : i32, i32
  }
  func.func @transform_1(%arg0: i32) -> (i32, i32) {
    %c0_i32 = arith.constant 0 : i32
    %c0_i32_0 = arith.constant 0 : i32
    %c0_i32_1 = arith.constant 0 : i32
    return %c0_i32, %c0_i32_0 : i32, i32
  }
  func.func @transform_2(%arg0: i32) -> (i32, i32) {
    %c0_i32 = arith.constant 0 : i32
    %c0_i32_0 = arith.constant 0 : i32
    %c0_i32_1 = arith.constant 0 : i32
    return %c0_i32, %c0_i32_0 : i32, i32
  }
  func.func @transform_3(%arg0: i32) -> (i32, i32) {
    %c0_i32 = arith.constant 0 : i32
    %c0_i32_0 = arith.constant 0 : i32
    return %arg0, %c0_i32 : i32, i32
  }
}

module attributes {stable_mosaic.version = 11 : i64} {
  func.func @_decoder_kernel(%arg0: i32, %arg1: memref<8x128xf32, #tpu.memory_space<vmem>>, %arg2: memref<128x128xf32, #tpu.memory_space<vmem>>, %arg3: memref<1x128xf32, #tpu.memory_space<vmem>>, %arg4: memref<8x128xf32, #tpu.memory_space<vmem>>) attributes {dimension_semantics = [#tpu.dimension_semantics<arbitrary>], iteration_bounds = array<i64: 2>, scalar_prefetch = 0 : i64, scratch_operands = 0 : i64, tpu.core_type = #tpu.core_type<tc>, window_params = [{transform_indices = @transform_0, window_bounds = array<i64: 8, 128>}, {pipeline_mode = #tpu.pipeline_mode<synchronous>, transform_indices = @transform_1, window_bounds = array<i64: 128, 128>}, {pipeline_mode = #tpu.pipeline_mode<synchronous>, transform_indices = @transform_2, window_bounds = array<i64: 1, 128>}, {transform_indices = @transform_3, window_bounds = array<i64: 8, 128>}]} {
    %c0 = arith.constant 0 : index
    %c0_0 = arith.constant 0 : index
    %0 = vector.load %arg1[%c0, %c0_0] : memref<8x128xf32, #tpu.memory_space<vmem>>, vector<8x128xf32>
    %c0_1 = arith.constant 0 : index
    %c0_2 = arith.constant 0 : index
    %1 = vector.load %arg2[%c0_1, %c0_2] : memref<128x128xf32, #tpu.memory_space<vmem>>, vector<128x128xf32>
    %cst = arith.constant dense<0.000000e+00> : vector<8x128xf32>
    %2 = tpu.matmul %0, %1, %cst {dimension_numbers = #tpu.dot_dimension_numbers<[1], [0], [0], [1], [0, 0, 1, 1], [], []>} : vector<8x128xf32>, vector<128x128xf32>, vector<8x128xf32> -> vector<8x128xf32>
    %c0_3 = arith.constant 0 : index
    %c0_4 = arith.constant 0 : index
    %3 = vector.load %arg3[%c0_3, %c0_4] : memref<1x128xf32, #tpu.memory_space<vmem>>, vector<1x128xf32>
    %4 = vector.broadcast %3 : vector<1x128xf32> to vector<8x128xf32>
    %5 = arith.addf %2, %4 : vector<8x128xf32>
    %cst_5 = arith.constant dense<0xFF800000> : vector<8xf32>
    %6 = vector.multi_reduction <maximumf>, %5, %cst_5 [1] : vector<8x128xf32> to vector<8xf32>
    %7 = vector.shape_cast %6 : vector<8xf32> to vector<8x1xf32>
    %8 = vector.broadcast %7 : vector<8x1xf32> to vector<8x128xf32>
    %9 = arith.subf %5, %8 : vector<8x128xf32>
    %10 = math.exp %9 : vector<8x128xf32>
    %cst_6 = arith.constant dense<0.000000e+00> : vector<8xf32>
    %11 = vector.multi_reduction <add>, %10, %cst_6 [1] : vector<8x128xf32> to vector<8xf32>
    %12 = vector.shape_cast %11 : vector<8xf32> to vector<8x1xf32>
    %13 = math.log %12 : vector<8x1xf32>
    %14 = vector.broadcast %13 : vector<8x1xf32> to vector<8x128xf32>
    %15 = arith.subf %9, %14 : vector<8x128xf32>
    %c0_7 = arith.constant 0 : index
    %c0_8 = arith.constant 0 : index
    %16 = vector.load %arg4[%c0_7, %c0_8] : memref<8x128xf32, #tpu.memory_space<vmem>>, vector<8x128xf32>
    tpu.vector_store %arg4[%c0_7, %c0_8], %15 {strides = array<i32>} : memref<8x128xf32, #tpu.memory_space<vmem>>, vector<8x128xf32>,
    return
  }
  func.func @transform_0(%arg0: i32) -> (i32, i32) {
    %c0_i32 = arith.constant 0 : i32
    %c0_i32_0 = arith.constant 0 : i32
    return %arg0, %c0_i32 : i32, i32
  }
  func.func @transform_1(%arg0: i32) -> (i32, i32) {
    %c0_i32 = arith.constant 0 : i32
    %c0_i32_0 = arith.constant 0 : i32
    %c0_i32_1 = arith.constant 0 : i32
    return %c0_i32, %c0_i32_0 : i32, i32
  }
  func.func @transform_2(%arg0: i32) -> (i32, i32) {
    %c0_i32 = arith.constant 0 : i32
    %c0_i32_0 = arith.constant 0 : i32
    %c0_i32_1 = arith.constant 0 : i32
    return %c0_i32, %c0_i32_0 : i32, i32
  }
  func.func @transform_3(%arg0: i32) -> (i32, i32) {
    %c0_i32 = arith.constant 0 : i32
    %c0_i32_0 = arith.constant 0 : i32
    return %arg0, %c0_i32 : i32, i32
  }
}

</mosaic_0001>

<bundles_post_ra>
// kernel: tpu_custom_call.1
= control target key start
LH: loop header
LB: loop body
LE: loop exit
PB: predicated region body
PF: predicated region fallthrough
CT: control target
= control target key end

     0   :  { %8 = vsyncpa [#allocation3], 0  ;;  %s921_s0 = inlined_call_operand.hbm [shape: f32[16,128], index: 0, kind: input, shape index: {}]   ;;  %s922_s1 = inlined_call_operand.hbm [shape: f32[128,128], index: 1, kind: input, shape index: {}]   ;;  %s923_s2 = inlined_call_operand.vmem [shape: f32[1,128], index: 2, kind: input, shape index: {}]   ;;  %s924_s3 = inlined_call_operand.hbm [shape: f32[16,128], index: 3, kind: output, shape index: {}]  }
   0x1   :  { %10 = vsyncpa [#allocation3 + $0x1], 0 }
   0x2   :  { %11 = vsyncpa [#allocation6], 0 }
   0x3   :  { %12 = vsyncpa [#allocation4], 0 }
   0x4   :  { %14 = vsyncpa [#allocation4 + $0x1], 0  ;;  %s715_s12 = smov 0   ;;  %s717_s13 = smov 0  }
   0x5   :  { %s719_s14 = smov 0   ;;  %s721_s15 = smov 0  }
   0x6 LB: > { %s736_s16 = sadd.s32 4294967295, %s685_s15   ;;  %s400_s17 = sadd.s32 4294967294, %s685_s15   ;;  %s685_s15 = sphi %s721_s15, %s944_s15   ;;  %s681_s14 = sphi %s719_s14, %s943_s14   ;;  %s677_s13 = sphi %s717_s13, %s942_s13   ;;  %s673_s12 = sphi %s715_s12, %s941_s12  }
   0x7   : > { %p40_p0 = scmp.ne.s32.totalorder %s677_s13, %s673_s12  ;;  %p925_p1 = scmp.eq.s32.totalorder %s736_s16, 0 }
   0x8   : > { %p112_p3 = scmp.eq.s32.totalorder %s400_s17, 1  ;;  %p401_p5 = scmp.ge.s32.totalorder %s685_s15, 1 }
   0x9   : > { %p745_p4 = por %p925_p1, %p40_p0  ;;  %p119_p7 = scmp.lt.s32.totalorder %s685_s15, 3 }
   0xa   : > { %p750_p6 = por %p112_p3, %p40_p0  ;;  %s687_s21 = smov [#allocation5]  }
   0xb   : > { %s928_s18 = scalar_select %p745_p4, 1, 0 }
   0xc   : > { %s929_s19 = scalar_select %p750_p6, 1, 0 }
   0xd   : > { %p755_p8 = pnand %p401_p5, %p119_p7  ;;  %s131_s22 = sshll.u32 %s687_s21, 4  ;;  %s759_s22 = int_to_ptr.vmem [resolvable:$true] %s131_s22 }
   0xe   : > { %s771_s24 = sadd.s32 1, %s685_s15   ;;  %s27_s25 = sadd.s32 1, %s681_s14 }
   0xf   : > { %s930_s20 = scalar_select %p755_p8, 1, 0 }
  0x10   : > { %p499_p9 = pneg %p755_p8  ;;  %s24_s26 = ssub.s32 %s685_s15, %s771_s24 }
  0x11   : > { %s557_s29 = scalar_lea.hbm %s922_s1, 2048 }
  0x12   : > { %p766_p11 = pnand %p499_p9, %p925_p1  ;;  %p558_p12 = scmp.ne.s32.totalorder %s922_s1, %s557_s29 }
  0x13   : > { %p564_p5 = scmp.lt.u32.totalorder %s557_s29, %s922_s1 }
  0x14   : > { %p559_p13 = pneg %p766_p11 }
  0x16   : > { %p560_p0 = pnand %p559_p13, %p558_p12 }
  0x18   : > { %p561_p3 = pneg %p560_p0 }
  0x1a   : > { %p566_p7 = pnand %p564_p5, %p561_p3 }
  0x1c   : > { %569 = shalt.err (!%p566_p7)
}
  0x1d   : > { %s570_s7 = scalar_lea.vmem %s759_s22, 2048  ;;  %p578_p2 = scmp.lt.s32.totalorder %s759_s22, %s759_s22 }
  0x1e   : > { %p571_p9 = scmp.ne.s32.totalorder %s759_s22, %s570_s7  ;;  %p579_p6 = scmp.lt.s32.totalorder %s570_s7, %s570_s7 }
  0x20   : > { %p573_p10 = pnand %p571_p9, %p559_p13  ;;  %p580_p4 = por %p579_p6, %p578_p2 }
  0x22   : > { %p574_p1 = pneg %p573_p10 }
  0x24   : > { %p581_p8 = pnand %p580_p4, %p574_p1 }
  0x26   : > { %584 = shalt.err (!%p581_p8)
}
  0x27   : > { %s688_s8 = smov 128   ;;  %s689_s9 = smov 8  }
  0x28   : > { %502 = dma.hbm_to_vmem [thread:$0]  (!%p766_p11), %s922_s1, 2048, %s759_s22, [#allocation6], %s688_s8, %s688_s8, %s689_s9  }
  0x29   : > { %p25_p2 = scmp.eq.s32.totalorder %s24_s26, 0  ;;  %p34_p1 = scmp.ne.s32.totalorder %s681_s14, %s677_s13 }
  0x2a   : > { %p35_p4 = scmp.eq.s32.totalorder %s685_s15, 0  ;;  %p512_p6 = scmp.lt.s32.totalorder %s685_s15, 2 }
  0x2b   : > { %s802_s17 = scalar_select %p25_p2, %s681_s14, %s27_s25  }
  0x2c   : > { %p36_p8 = por %p35_p4, %p34_p1  ;;  %p932_p10 = scmp.eq.s32.totalorder %s736_s16, 1 }
  0x2d   : > { %s148_s27 = sand.u32 1, %s681_s14   ;;  %s405_s28 = sshll.u32 %s685_s15, 7 }
  0x2e   : > { %p806_p12 = por %p932_p10, %p34_p1  ;;  %s404_s29 = sshll.u32 %s148_s27, 3 }
  0x2f   : > { %s815_s4 = scalar_lea.hbm %s921_s0, %s405_s28  ;;  %s152_s22 = scalar_lea.vmem [#allocation2], %s404_s29 }
  0x30   : > { %s159_s25 = sshll.u32 %s152_s22, 4  ;;  %p817_p11 = pnand %p512_p6, %p36_p8  ;;  %s821_s25 = int_to_ptr.vmem [resolvable:$true] %s159_s25 }
  0x31   : > { %s149_s5 = scalar_lea.sflag [#allocation3], %s148_s27  ;;  %s585_s6 = scalar_lea.hbm %s815_s4, 128 }
  0x32   : > { %p586_p13 = scmp.ne.s32.totalorder %s815_s4, %s585_s6  ;;  %p587_p0 = pneg %p817_p11 }
  0x33   : > { %s590_s9 = scalar_lea.hbm %s921_s0, 256  ;;  %p591_p7 = scmp.lt.u32.totalorder %s815_s4, %s921_s0 }
  0x34   : > { %p588_p3 = pnand %p587_p0, %p586_p13  ;;  %p592_p9 = scmp.lt.u32.totalorder %s590_s9, %s585_s6 }
  0x35   : > { %p594_p1 = scmp.lt.u32.totalorder %s585_s6, %s815_s4 }
  0x36   : > { %p589_p5 = pneg %p588_p3  ;;  %p593_p2 = por %p592_p9, %p591_p7 }
  0x38   : > { %p595_p4 = por %p594_p1, %p593_p2 }
  0x3a   : > { %p596_p6 = pnand %p595_p4, %p589_p5 }
  0x3c   : > { %599 = shalt.err (!%p596_p6)
}
  0x3d   : > { %s600_s27 = scalar_lea.vmem %s821_s25, 128  ;;  %s690_s28 = smov [#allocation2]  }
  0x3e   : > { %p601_p8 = scmp.ne.s32.totalorder %s821_s25, %s600_s27  ;;  %s605_s29 = sshll.u32 %s690_s28, 4  ;;  %s606_s29 = int_to_ptr.vmem [resolvable:$false] %s605_s29 }
  0x3f   : > { %s607_s23 = scalar_lea.vmem %s606_s29, 256  ;;  %p608_p3 = scmp.lt.s32.totalorder %s821_s25, %s606_s29 }
  0x40   : > { %p603_p10 = pnand %p601_p8, %p587_p0  ;;  %p609_p7 = scmp.lt.s32.totalorder %s607_s23, %s600_s27 }
  0x42   : > { %p604_p13 = pneg %p603_p10  ;;  %p610_p9 = por %p609_p7, %p608_p3 }
  0x44   : > { %p611_p2 = pnand %p610_p9, %p604_p13 }
  0x46   : > { %614 = shalt.err (!%p611_p2)
}
  0x47   : > { %506 = dma.hbm_to_vmem [thread:$0]  (!%p817_p11), %s815_s4, 128, %s821_s25, %s149_s5  }
  0x48   : > { %p935_p5 = scmp.ne.s32.totalorder %s930_s20, 0 }
  0x49   : > { %s851_s30 = sand.u32 (!%p935_p5), 1, %s677_s13   ;;  %p936_p0 = scmp.ne.s32.totalorder (!%p935_p5), %s928_s18, 0 }
  0x4a   : > { %168 = sbr.rel (%p935_p5) target bundleno = 661 (0x295), region = 32  ;;  %s407_s22 = sshll.u32 (!%p935_p5), %s851_s30, 3 }
  0x4b   : > { %s171_s6 = scalar_lea.sflag (!%p935_p5), [#allocation3], %s851_s30  ;;  %s857_s7 = scalar_lea.vmem (!%p935_p5), [#allocation2], %s407_s22 }
  0x51   : > { %660 = dma.done.wait (%p936_p0), %s171_s6, 128  }
  0x52   : > { %662 = vsyncadd (%p936_p0), %s171_s6, 4294967168  ;;  %p937_p11 = scmp.eq.s32.totalorder %s736_s16, 0 }
  0x54   : > { %664 = dma.done.wait (%p937_p11), [#allocation6], 2048   ;;  %p938_p1 = pmov %p937_p11 }
  0x55   : > { %v691_v0 = vmov 0.0|0.0   ;;  %vm692_vm0 = vmmov 0   ;;  %v693_v1 = vmov 0.0   ;;  %v202_v2 = vld [vmem:[#allocation5] sm:$0xff]  ;;  %v203_v3 = vld [vmem:[#allocation5 + $0x8] sm:$0xff]  ;;  %v204_v4 = vld [vmem:[#allocation5 + $0x10] sm:$0xff] }
  0x56   : > { %666 = vsyncadd (%p938_p1), [#allocation6], 4294965248  ;;  %467 = vmatprep.subr.bf16.mxu0 %v691_v0  ;;  %464 = vmatprep.mubr.msk.f32.mxu0 %vm692_vm0, %v693_v1  ;;  %v468_v5 = vpack.c.bf16 %v203_v3, %v202_v2  ;;  %v205_v6 = vld [vmem:[#allocation5 + $0x18] sm:$0xff]  ;;  %v206_v8 = vld [vmem:[#allocation5 + $0x20] sm:$0xff]  ;;  %s412_s4 = sshll.u32 %s736_s16, 7  ;;  %s200_s25 = scalar_lea.vmem [#allocation7], %s407_s22 }
  0x57   : > { %v471_v7 = vpack.c.bf16 %v205_v6, %v204_v4  ;;  %v207_v9 = vld [vmem:[#allocation5 + $0x28] sm:$0xff]  ;;  %v208_v11 = vld [vmem:[#allocation5 + $0x30] sm:$0xff]  ;;  %v209_v12 = vld [vmem:[#allocation5 + $0x38] sm:$0xff]  ;;  %s320_s26 = sshll.u32 %s200_s25, 4  ;;  %s877_s9 = scalar_lea.hbm %s924_s3, %s412_s4  ;;  %s879_s26 = int_to_ptr.vmem [resolvable:$true] %s320_s26 }
  0x58   : > { %469 = vmatpush3.bf16.msra.mxu0 %v468_v5  ;;  %v474_v10 = vpack.c.bf16 %v207_v9, %v206_v8  ;;  %v477_v13 = vpack.c.bf16 %v209_v12, %v208_v11  ;;  %v210_v14 = vld [vmem:[#allocation5 + $0x40] sm:$0xff]  ;;  %v211_v15 = vld [vmem:[#allocation5 + $0x48] sm:$0xff]  ;;  %v212_v17 = vld [vmem:[#allocation5 + $0x50] sm:$0xff]  ;;  %s307_s10 = scalar_lea.sflag [#allocation4], %s851_s30  ;;  %s615_s11 = scalar_lea.vmem %s879_s26, 128 }
  0x59   : > { %470 = vmatprep.subr.bf16.mxu0 %v691_v0  ;;  %v480_v16 = vpack.c.bf16 %v211_v15, %v210_v14  ;;  %v213_v18 = vld [vmem:[#allocation5 + $0x58] sm:$0xff]  ;;  %v214_v20 = vld [vmem:[#allocation5 + $0x60] sm:$0xff]  ;;  %v215_v21 = vld [vmem:[#allocation5 + $0x68] sm:$0xff]  ;;  %p616_p4 = scmp.ne.s32.totalorder %s879_s26, %s615_s11  ;;  %s694_s16 = smov [#allocation7]  }
  0x5a   : > { %v483_v19 = vpack.c.bf16 %v213_v18, %v212_v17  ;;  %v486_v22 = vpack.c.bf16 %v215_v21, %v214_v20  ;;  %v216_v23 = vld [vmem:[#allocation5 + $0x70] sm:$0xff]  ;;  %v217_v24 = vld [vmem:[#allocation5 + $0x78] sm:$0xff]  ;;  %s619_s27 = sshll.u32 %s694_s16, 4  ;;  %s620_s27 = int_to_ptr.vmem [resolvable:$false] %s619_s27 }
  0x5b   : > { %v489_v25 = vpack.c.bf16 %v217_v24, %v216_v23  ;;  %v201_v26 = vld [vmem:[%s857_s7] sm:$0xff]  ;;  %p617_p6 = pnand %p616_p4, %p806_p12  ;;  %s621_s28 = scalar_lea.vmem %s620_s27, 256 }
  0x5c   : > { %472 = vmatpush3.bf16.msra.mxu0 %v471_v7  ;;  %v410_v27 = vld [vmem:[%s923_s2] ss:$0 sm:$0xff]  ;;  %p622_p10 = scmp.lt.s32.totalorder %s879_s26, %s620_s27  ;;  %p623_p13 = scmp.lt.s32.totalorder %s621_s28, %s615_s11 }
  0x5d   : > { %473 = vmatprep.subr.bf16.mxu0 %v691_v0  ;;  %p618_p8 = pneg %p617_p6 }
  0x5e   : > { %p624_p3 = por %p623_p13, %p622_p10 }
  0x60   : > { %475 = vmatpush3.bf16.msra.mxu0 %v474_v10  ;;  %p625_p7 = pnand %p624_p3, %p618_p8 }
  0x61   : > { %476 = vmatprep.subr.bf16.mxu0 %v691_v0 }
  0x64   : > { %478 = vmatpush3.bf16.msra.mxu0 %v477_v13 }
  0x65   : > { %479 = vmatprep.subr.bf16.mxu0 %v691_v0 }
  0x68   : > { %481 = vmatpush3.bf16.msra.mxu0 %v480_v16 }
  0x69   : > { %482 = vmatprep.subr.bf16.mxu0 %v691_v0 }
  0x6c   : > { %484 = vmatpush3.bf16.msra.mxu0 %v483_v19 }
  0x6d   : > { %485 = vmatprep.subr.bf16.mxu0 %v691_v0 }
  0x70   : > { %487 = vmatpush3.bf16.msra.mxu0 %v486_v22 }
  0x71   : > { %488 = vmatprep.subr.bf16.mxu0 %v691_v0 }
  0x74   : > { %490 = vmatpush3.bf16.msra.mxu0 %v489_v25 }
  0x77   : > { %465 = vmatmul.mubr.f32.vlgmr.msra.gmra.mrb[0].mxu0 %v201_v26 }
 0x14a   : > { %v291_v28 = vpop.f32.mrb[0].mxu0 }
 0x14b   : > { %v292_v29 = vadd.f32 %v410_v27, %v291_v28  ;;  %v466_v30 = vpop.f32.mrb[1].mxu0 }
 0x14d   : > { %295 = vmax.xlane.f32.xlu0 %v292_v29 }
 0x1da   : > { %v296_v31 = vpop.xlane.xlu0 %295 }
 0x1db   : > { %v297_v32 = vsub.f32 %v292_v29, %v296_v31 }
 0x1dd   : > { %v298_v33 = vmul.f32 1.442695, %v297_v32 }
 0x1df   : > { %553 = vpow2.f32 %v298_v33 }
 0x1e9   : > { %v554_v34 = vpop.eup %553 }
 0x1ea   : > { %300 = vadd.xlane.f32.xlu0 %v554_v34 }
 0x277   : > { %v301_v35 = vpop.xlane.xlu0 %300 }
 0x278   : > { %555 = vlog2.f32 %v301_v35 }
 0x282   : > { %v556_v36 = vpop.eup %555 }
 0x283   : > { %v303_v37 = vmul.f32 0.6931472, %v556_v36 }
 0x285   : > { %v304_v38 = vsub.f32 %v297_v32, %v303_v37 }
 0x287   : > { %305 = vst [vmem:[%s200_s25] sm:$0xff] %v304_v38 }
 0x288   : > { %628 = shalt.err (!%p625_p7)
}
 0x289   : > { %s629_s29 = scalar_lea.hbm %s877_s9, 128  ;;  %s633_s22 = scalar_lea.hbm %s924_s3, 256 }
 0x28a   : > { %p630_p9 = scmp.ne.s32.totalorder %s877_s9, %s629_s29  ;;  %p634_p0 = scmp.lt.u32.totalorder %s877_s9, %s924_s3 }
 0x28b   : > { %p635_p11 = scmp.lt.u32.totalorder %s633_s22, %s629_s29  ;;  %p637_p4 = scmp.lt.u32.totalorder %s629_s29, %s877_s9 }
 0x28c   : > { %p631_p2 = pnand %p630_p9, %p806_p12 }
 0x28d   : > { %p636_p1 = por %p635_p11, %p634_p0 }
 0x28e   : > { %p632_p5 = pneg %p631_p2 }
 0x28f   : > { %p638_p6 = por %p637_p4, %p636_p1 }
 0x291   : > { %p639_p8 = pnand %p638_p6, %p632_p5 }
 0x293   : > { %642 = shalt.err (!%p639_p8)
}
 0x294   : > { %497 = dma.vmem_to_hbm [thread:$0]  (%p806_p12), %s879_s26, 128, %s877_s9, %s307_s10  }
 0x295 PF: > { %s332_s18 = sand.u32 1, %s673_s12   ;;  %p939_p10 = scmp.ne.s32.totalorder %s929_s19, 0 }
 0x296   : > { %p940_p13 = scmp.ge.s32.totalorder %s685_s15, 2  ;;  %s333_s20 = scalar_lea.sflag [#allocation4], %s332_s18 }
 0x298   : > { %p508_p3 = pnand %p940_p13, %p939_p10 }
 0x29a   : > { %668 = dma.done.wait (!%p508_p3), %s333_s20, 128  }
 0x29b   : > { %670 = vsyncadd (!%p508_p3), %s333_s20, 4294967168  ;;  %p17_p7 = scmp.ge.s32.totalorder %s771_s24, 4   ;;  %s941_s12 = smov %s677_s13 }
 0x29c   : > { %s942_s13 = smov %s681_s14  ;;  %s943_s14 = smov %s802_s17 }
 0x29d   : > { %s944_s15 = smov %s771_s24  ;;  %19 = sbr.rel (!%p17_p7) target bundleno = 6 (0x6), region = 81 }
 0x2a4   :  { %338 = vsyncpa [#allocation3], 1 }
 0x2a5   :  { %340 = vsyncpa [#allocation3 + $0x1], 1 }
 0x2a6   :  { %341 = vsyncpa [#allocation6], 1 }
 0x2a7   :  { %342 = vsyncpa [#allocation4], 1 }
 0x2a8   :  { %344 = vsyncpa [#allocation4 + $0x1], 1 }

// kernel: tpu_custom_call.1
= control target key start
LH: loop header
LB: loop body
LE: loop exit
PB: predicated region body
PF: predicated region fallthrough
CT: control target
= control target key end

     0   :  { %8 = vsyncpa [#allocation3], 0  ;;  %s921_s0 = inlined_call_operand.hbm [shape: f32[16,128], index: 0, kind: input, shape index: {}]   ;;  %s922_s1 = inlined_call_operand.hbm [shape: f32[128,128], index: 1, kind: input, shape index: {}]   ;;  %s923_s2 = inlined_call_operand.vmem [shape: f32[1,128], index: 2, kind: input, shape index: {}]   ;;  %s924_s3 = inlined_call_operand.hbm [shape: f32[16,128], index: 3, kind: output, shape index: {}]  }
   0x1   :  { %10 = vsyncpa [#allocation3 + $0x1], 0 }
   0x2   :  { %11 = vsyncpa [#allocation6], 0 }
   0x3   :  { %12 = vsyncpa [#allocation4], 0 }
   0x4   :  { %14 = vsyncpa [#allocation4 + $0x1], 0  ;;  %s715_s12 = smov 0   ;;  %s717_s13 = smov 0  }
   0x5   :  { %s719_s14 = smov 0   ;;  %s721_s15 = smov 0  }
   0x6 LB: > { %s736_s16 = sadd.s32 4294967295, %s685_s15   ;;  %s400_s17 = sadd.s32 4294967294, %s685_s15   ;;  %s685_s15 = sphi %s721_s15, %s944_s15   ;;  %s681_s14 = sphi %s719_s14, %s943_s14   ;;  %s677_s13 = sphi %s717_s13, %s942_s13   ;;  %s673_s12 = sphi %s715_s12, %s941_s12  }
   0x7   : > { %p40_p0 = scmp.ne.s32.totalorder %s677_s13, %s673_s12  ;;  %p925_p1 = scmp.eq.s32.totalorder %s736_s16, 0 }
   0x8   : > { %p112_p3 = scmp.eq.s32.totalorder %s400_s17, 1  ;;  %p401_p5 = scmp.ge.s32.totalorder %s685_s15, 1 }
   0x9   : > { %p745_p4 = por %p925_p1, %p40_p0  ;;  %p119_p7 = scmp.lt.s32.totalorder %s685_s15, 3 }
   0xa   : > { %p750_p6 = por %p112_p3, %p40_p0  ;;  %s687_s21 = smov [#allocation5]  }
   0xb   : > { %s928_s18 = scalar_select %p745_p4, 1, 0 }
   0xc   : > { %s929_s19 = scalar_select %p750_p6, 1, 0 }
   0xd   : > { %p755_p8 = pnand %p401_p5, %p119_p7  ;;  %s131_s22 = sshll.u32 %s687_s21, 4  ;;  %s759_s22 = int_to_ptr.vmem [resolvable:$true] %s131_s22 }
   0xe   : > { %s771_s24 = sadd.s32 1, %s685_s15   ;;  %s27_s25 = sadd.s32 1, %s681_s14 }
   0xf   : > { %s930_s20 = scalar_select %p755_p8, 1, 0 }
  0x10   : > { %p499_p9 = pneg %p755_p8  ;;  %s24_s26 = ssub.s32 %s685_s15, %s771_s24 }
  0x11   : > { %s557_s29 = scalar_lea.hbm %s922_s1, 2048 }
  0x12   : > { %p766_p11 = pnand %p499_p9, %p925_p1  ;;  %p558_p12 = scmp.ne.s32.totalorder %s922_s1, %s557_s29 }
  0x13   : > { %p564_p5 = scmp.lt.u32.totalorder %s557_s29, %s922_s1 }
  0x14   : > { %p559_p13 = pneg %p766_p11 }
  0x16   : > { %p560_p0 = pnand %p559_p13, %p558_p12 }
  0x18   : > { %p561_p3 = pneg %p560_p0 }
  0x1a   : > { %p566_p7 = pnand %p564_p5, %p561_p3 }
  0x1c   : > { %569 = shalt.err (!%p566_p7)
}
  0x1d   : > { %s570_s7 = scalar_lea.vmem %s759_s22, 2048  ;;  %p578_p2 = scmp.lt.s32.totalorder %s759_s22, %s759_s22 }
  0x1e   : > { %p571_p9 = scmp.ne.s32.totalorder %s759_s22, %s570_s7  ;;  %p579_p6 = scmp.lt.s32.totalorder %s570_s7, %s570_s7 }
  0x20   : > { %p573_p10 = pnand %p571_p9, %p559_p13  ;;  %p580_p4 = por %p579_p6, %p578_p2 }
  0x22   : > { %p574_p1 = pneg %p573_p10 }
  0x24   : > { %p581_p8 = pnand %p580_p4, %p574_p1 }
  0x26   : > { %584 = shalt.err (!%p581_p8)
}
  0x27   : > { %s688_s8 = smov 128   ;;  %s689_s9 = smov 8  }
  0x28   : > { %502 = dma.hbm_to_vmem [thread:$0]  (!%p766_p11), %s922_s1, 2048, %s759_s22, [#allocation6], %s688_s8, %s688_s8, %s689_s9  }
  0x29   : > { %p25_p2 = scmp.eq.s32.totalorder %s24_s26, 0  ;;  %p34_p1 = scmp.ne.s32.totalorder %s681_s14, %s677_s13 }
  0x2a   : > { %p35_p4 = scmp.eq.s32.totalorder %s685_s15, 0  ;;  %p512_p6 = scmp.lt.s32.totalorder %s685_s15, 2 }
  0x2b   : > { %s802_s17 = scalar_select %p25_p2, %s681_s14, %s27_s25  }
  0x2c   : > { %p36_p8 = por %p35_p4, %p34_p1  ;;  %p932_p10 = scmp.eq.s32.totalorder %s736_s16, 1 }
  0x2d   : > { %s148_s27 = sand.u32 1, %s681_s14   ;;  %s405_s28 = sshll.u32 %s685_s15, 7 }
  0x2e   : > { %p806_p12 = por %p932_p10, %p34_p1  ;;  %s404_s29 = sshll.u32 %s148_s27, 3 }
  0x2f   : > { %s815_s4 = scalar_lea.hbm %s921_s0, %s405_s28  ;;  %s152_s22 = scalar_lea.vmem [#allocation2], %s404_s29 }
  0x30   : > { %s159_s25 = sshll.u32 %s152_s22, 4  ;;  %p817_p11 = pnand %p512_p6, %p36_p8  ;;  %s821_s25 = int_to_ptr.vmem [resolvable:$true] %s159_s25 }
  0x31   : > { %s149_s5 = scalar_lea.sflag [#allocation3], %s148_s27  ;;  %s585_s6 = scalar_lea.hbm %s815_s4, 128 }
  0x32   : > { %p586_p13 = scmp.ne.s32.totalorder %s815_s4, %s585_s6  ;;  %p587_p0 = pneg %p817_p11 }
  0x33   : > { %s590_s9 = scalar_lea.hbm %s921_s0, 256  ;;  %p591_p7 = scmp.lt.u32.totalorder %s815_s4, %s921_s0 }
  0x34   : > { %p588_p3 = pnand %p587_p0, %p586_p13  ;;  %p592_p9 = scmp.lt.u32.totalorder %s590_s9, %s585_s6 }
  0x35   : > { %p594_p1 = scmp.lt.u32.totalorder %s585_s6, %s815_s4 }
  0x36   : > { %p589_p5 = pneg %p588_p3  ;;  %p593_p2 = por %p592_p9, %p591_p7 }
  0x38   : > { %p595_p4 = por %p594_p1, %p593_p2 }
  0x3a   : > { %p596_p6 = pnand %p595_p4, %p589_p5 }
  0x3c   : > { %599 = shalt.err (!%p596_p6)
}
  0x3d   : > { %s600_s27 = scalar_lea.vmem %s821_s25, 128  ;;  %s690_s28 = smov [#allocation2]  }
  0x3e   : > { %p601_p8 = scmp.ne.s32.totalorder %s821_s25, %s600_s27  ;;  %s605_s29 = sshll.u32 %s690_s28, 4  ;;  %s606_s29 = int_to_ptr.vmem [resolvable:$false] %s605_s29 }
  0x3f   : > { %s607_s23 = scalar_lea.vmem %s606_s29, 256  ;;  %p608_p3 = scmp.lt.s32.totalorder %s821_s25, %s606_s29 }
  0x40   : > { %p603_p10 = pnand %p601_p8, %p587_p0  ;;  %p609_p7 = scmp.lt.s32.totalorder %s607_s23, %s600_s27 }
  0x42   : > { %p604_p13 = pneg %p603_p10  ;;  %p610_p9 = por %p609_p7, %p608_p3 }
  0x44   : > { %p611_p2 = pnand %p610_p9, %p604_p13 }
  0x46   : > { %614 = shalt.err (!%p611_p2)
}
  0x47   : > { %506 = dma.hbm_to_vmem [thread:$0]  (!%p817_p11), %s815_s4, 128, %s821_s25, %s149_s5  }
  0x48   : > { %p935_p5 = scmp.ne.s32.totalorder %s930_s20, 0 }
  0x49   : > { %s851_s30 = sand.u32 (!%p935_p5), 1, %s677_s13   ;;  %p936_p0 = scmp.ne.s32.totalorder (!%p935_p5), %s928_s18, 0 }
  0x4a   : > { %168 = sbr.rel (%p935_p5) target bundleno = 661 (0x295), region = 32  ;;  %s407_s22 = sshll.u32 (!%p935_p5), %s851_s30, 3 }
  0x4b   : > { %s171_s6 = scalar_lea.sflag (!%p935_p5), [#allocation3], %s851_s30  ;;  %s857_s7 = scalar_lea.vmem (!%p935_p5), [#allocation2], %s407_s22 }
  0x51   : > { %660 = dma.done.wait (%p936_p0), %s171_s6, 128  }
  0x52   : > { %662 = vsyncadd (%p936_p0), %s171_s6, 4294967168  ;;  %p937_p11 = scmp.eq.s32.totalorder %s736_s16, 0 }
  0x54   : > { %664 = dma.done.wait (%p937_p11), [#allocation6], 2048   ;;  %p938_p1 = pmov %p937_p11 }
  0x55   : > { %v691_v0 = vmov 0.0|0.0   ;;  %vm692_vm0 = vmmov 0   ;;  %v693_v1 = vmov 0.0   ;;  %v202_v2 = vld [vmem:[#allocation5] sm:$0xff]  ;;  %v203_v3 = vld [vmem:[#allocation5 + $0x8] sm:$0xff]  ;;  %v204_v4 = vld [vmem:[#allocation5 + $0x10] sm:$0xff] }
  0x56   : > { %666 = vsyncadd (%p938_p1), [#allocation6], 4294965248  ;;  %467 = vmatprep.subr.bf16.mxu0 %v691_v0  ;;  %464 = vmatprep.mubr.msk.f32.mxu0 %vm692_vm0, %v693_v1  ;;  %v468_v5 = vpack.c.bf16 %v203_v3, %v202_v2  ;;  %v205_v6 = vld [vmem:[#allocation5 + $0x18] sm:$0xff]  ;;  %v206_v8 = vld [vmem:[#allocation5 + $0x20] sm:$0xff]  ;;  %s412_s4 = sshll.u32 %s736_s16, 7  ;;  %s200_s25 = scalar_lea.vmem [#allocation7], %s407_s22 }
  0x57   : > { %v471_v7 = vpack.c.bf16 %v205_v6, %v204_v4  ;;  %v207_v9 = vld [vmem:[#allocation5 + $0x28] sm:$0xff]  ;;  %v208_v11 = vld [vmem:[#allocation5 + $0x30] sm:$0xff]  ;;  %v209_v12 = vld [vmem:[#allocation5 + $0x38] sm:$0xff]  ;;  %s320_s26 = sshll.u32 %s200_s25, 4  ;;  %s877_s9 = scalar_lea.hbm %s924_s3, %s412_s4  ;;  %s879_s26 = int_to_ptr.vmem [resolvable:$true] %s320_s26 }
  0x58   : > { %469 = vmatpush3.bf16.msra.mxu0 %v468_v5  ;;  %v474_v10 = vpack.c.bf16 %v207_v9, %v206_v8  ;;  %v477_v13 = vpack.c.bf16 %v209_v12, %v208_v11  ;;  %v210_v14 = vld [vmem:[#allocation5 + $0x40] sm:$0xff]  ;;  %v211_v15 = vld [vmem:[#allocation5 + $0x48] sm:$0xff]  ;;  %v212_v17 = vld [vmem:[#allocation5 + $0x50] sm:$0xff]  ;;  %s307_s10 = scalar_lea.sflag [#allocation4], %s851_s30  ;;  %s615_s11 = scalar_lea.vmem %s879_s26, 128 }
  0x59   : > { %470 = vmatprep.subr.bf16.mxu0 %v691_v0  ;;  %v480_v16 = vpack.c.bf16 %v211_v15, %v210_v14  ;;  %v213_v18 = vld [vmem:[#allocation5 + $0x58] sm:$0xff]  ;;  %v214_v20 = vld [vmem:[#allocation5 + $0x60] sm:$0xff]  ;;  %v215_v21 = vld [vmem:[#allocation5 + $0x68] sm:$0xff]  ;;  %p616_p4 = scmp.ne.s32.totalorder %s879_s26, %s615_s11  ;;  %s694_s16 = smov [#allocation7]  }
  0x5a   : > { %v483_v19 = vpack.c.bf16 %v213_v18, %v212_v17  ;;  %v486_v22 = vpack.c.bf16 %v215_v21, %v214_v20  ;;  %v216_v23 = vld [vmem:[#allocation5 + $0x70] sm:$0xff]  ;;  %v217_v24 = vld [vmem:[#allocation5 + $0x78] sm:$0xff]  ;;  %s619_s27 = sshll.u32 %s694_s16, 4  ;;  %s620_s27 = int_to_ptr.vmem [resolvable:$false] %s619_s27 }
  0x5b   : > { %v489_v25 = vpack.c.bf16 %v217_v24, %v216_v23  ;;  %v201_v26 = vld [vmem:[%s857_s7] sm:$0xff]  ;;  %p617_p6 = pnand %p616_p4, %p806_p12  ;;  %s621_s28 = scalar_lea.vmem %s620_s27, 256 }
  0x5c   : > { %472 = vmatpush3.bf16.msra.mxu0 %v471_v7  ;;  %v410_v27 = vld [vmem:[%s923_s2] ss:$0 sm:$0xff]  ;;  %p622_p10 = scmp.lt.s32.totalorder %s879_s26, %s620_s27  ;;  %p623_p13 = scmp.lt.s32.totalorder %s621_s28, %s615_s11 }
  0x5d   : > { %473 = vmatprep.subr.bf16.mxu0 %v691_v0  ;;  %p618_p8 = pneg %p617_p6 }
  0x5e   : > { %p624_p3 = por %p623_p13, %p622_p10 }
  0x60   : > { %475 = vmatpush3.bf16.msra.mxu0 %v474_v10  ;;  %p625_p7 = pnand %p624_p3, %p618_p8 }
  0x61   : > { %476 = vmatprep.subr.bf16.mxu0 %v691_v0 }
  0x64   : > { %478 = vmatpush3.bf16.msra.mxu0 %v477_v13 }
  0x65   : > { %479 = vmatprep.subr.bf16.mxu0 %v691_v0 }
  0x68   : > { %481 = vmatpush3.bf16.msra.mxu0 %v480_v16 }
  0x69   : > { %482 = vmatprep.subr.bf16.mxu0 %v691_v0 }
  0x6c   : > { %484 = vmatpush3.bf16.msra.mxu0 %v483_v19 }
  0x6d   : > { %485 = vmatprep.subr.bf16.mxu0 %v691_v0 }
  0x70   : > { %487 = vmatpush3.bf16.msra.mxu0 %v486_v22 }
  0x71   : > { %488 = vmatprep.subr.bf16.mxu0 %v691_v0 }
  0x74   : > { %490 = vmatpush3.bf16.msra.mxu0 %v489_v25 }
  0x77   : > { %465 = vmatmul.mubr.f32.vlgmr.msra.gmra.mrb[0].mxu0 %v201_v26 }
 0x14a   : > { %v291_v28 = vpop.f32.mrb[0].mxu0 }
 0x14b   : > { %v292_v29 = vadd.f32 %v410_v27, %v291_v28  ;;  %v466_v30 = vpop.f32.mrb[1].mxu0 }
 0x14d   : > { %295 = vmax.xlane.f32.xlu0 %v292_v29 }
 0x1da   : > { %v296_v31 = vpop.xlane.xlu0 %295 }
 0x1db   : > { %v297_v32 = vsub.f32 %v292_v29, %v296_v31 }
 0x1dd   : > { %v298_v33 = vmul.f32 1.442695, %v297_v32 }
 0x1df   : > { %553 = vpow2.f32 %v298_v33 }
 0x1e9   : > { %v554_v34 = vpop.eup %553 }
 0x1ea   : > { %300 = vadd.xlane.f32.xlu0 %v554_v34 }
 0x277   : > { %v301_v35 = vpop.xlane.xlu0 %300 }
 0x278   : > { %555 = vlog2.f32 %v301_v35 }
 0x282   : > { %v556_v36 = vpop.eup %555 }
 0x283   : > { %v303_v37 = vmul.f32 0.6931472, %v556_v36 }
 0x285   : > { %v304_v38 = vsub.f32 %v297_v32, %v303_v37 }
 0x287   : > { %305 = vst [vmem:[%s200_s25] sm:$0xff] %v304_v38 }
 0x288   : > { %628 = shalt.err (!%p625_p7)
}
 0x289   : > { %s629_s29 = scalar_lea.hbm %s877_s9, 128  ;;  %s633_s22 = scalar_lea.hbm %s924_s3, 256 }
 0x28a   : > { %p630_p9 = scmp.ne.s32.totalorder %s877_s9, %s629_s29  ;;  %p634_p0 = scmp.lt.u32.totalorder %s877_s9, %s924_s3 }
 0x28b   : > { %p635_p11 = scmp.lt.u32.totalorder %s633_s22, %s629_s29  ;;  %p637_p4 = scmp.lt.u32.totalorder %s629_s29, %s877_s9 }
 0x28c   : > { %p631_p2 = pnand %p630_p9, %p806_p12 }
 0x28d   : > { %p636_p1 = por %p635_p11, %p634_p0 }
 0x28e   : > { %p632_p5 = pneg %p631_p2 }
 0x28f   : > { %p638_p6 = por %p637_p4, %p636_p1 }
 0x291   : > { %p639_p8 = pnand %p638_p6, %p632_p5 }
 0x293   : > { %642 = shalt.err (!%p639_p8)
}
 0x294   : > { %497 = dma.vmem_to_hbm [thread:$0]  (%p806_p12), %s879_s26, 128, %s877_s9, %s307_s10  }
 0x295 PF: > { %s332_s18 = sand.u32 1, %s673_s12   ;;  %p939_p10 = scmp.ne.s32.totalorder %s929_s19, 0 }
 0x296   : > { %p940_p13 = scmp.ge.s32.totalorder %s685_s15, 2  ;;  %s333_s20 = scalar_lea.sflag [#allocation4], %s332_s18 }
 0x298   : > { %p508_p3 = pnand %p940_p13, %p939_p10 }
 0x29a   : > { %668 = dma.done.wait (!%p508_p3), %s333_s20, 128  }
 0x29b   : > { %670 = vsyncadd (!%p508_p3), %s333_s20, 4294967168  ;;  %p17_p7 = scmp.ge.s32.totalorder %s771_s24, 4   ;;  %s941_s12 = smov %s677_s13 }
 0x29c   : > { %s942_s13 = smov %s681_s14  ;;  %s943_s14 = smov %s802_s17 }
 0x29d   : > { %s944_s15 = smov %s771_s24  ;;  %19 = sbr.rel (!%p17_p7) target bundleno = 6 (0x6), region = 81 }
 0x2a4   :  { %338 = vsyncpa [#allocation3], 1 }
 0x2a5   :  { %340 = vsyncpa [#allocation3 + $0x1], 1 }
 0x2a6   :  { %341 = vsyncpa [#allocation6], 1 }
 0x2a7   :  { %342 = vsyncpa [#allocation4], 1 }
 0x2a8   :  { %344 = vsyncpa [#allocation4 + $0x1], 1 }

</bundles_post_ra>
